<compile_context>
chip_gen: v7x
topology: tpu7x:2x2x1
jax: 0.10.0
libtpu: 0.0.40
codegen_flags: <defaults>
</compile_context>

<pallas_src>
import jax
import jax.numpy as jnp
from jax.experimental import pallas as pl
from jax.experimental.pallas import tpu as pltpu

N, CIN, H, W = 2, 4, 16, 16
COUT, KH, KW = 8, 3, 3
EPS = 1e-5
HW = H * W            # 256 (lane axis, multiple of 128)
P = N * HW            # 512 pixels per channel for BN stats


def resconv_kernel(x_ref, wbig_ref, wsc_ref, g1_ref, b1_ref, g2_ref, b2_ref, out_ref):
    """Single invocation; all refs in VMEM (everything is a few KB).

    x_ref    : (N*CIN, H*W)           NCHW input, flat pixels on the lane axis
    wbig_ref : (N*COUT, KH*KW*N*CIN)  batch-block-diagonal 3x3 weights (one fused matmul)
    wsc_ref  : (N*COUT, N*CIN)        batch-block-diagonal 1x1 shortcut weights
    g*/b*    : (COUT, 1)              BN affine params per branch
    out_ref  : (N*COUT, H*W)          NCHW-flat output (lane-dense)
    """
    x2 = x_ref[...]                                        # (8, 256)

    # Pixel-position info for the implicit padding=1 halo (W is a power of two).
    col = jax.lax.broadcasted_iota(jnp.int32, (1, HW), 1)
    wpos = jnp.bitwise_and(col, W - 1)

    # im2col via lane rotations: tap (kh, kw) needs x[h+kh-1, w+kw-1], i.e. a flat
    # shift of (kh-1)*W + (kw-1) with out-of-image source pixels zeroed by masks.
    taps = []
    for kh in range(KH):
        for kw in range(KW):
            dh, dw = kh - 1, kw - 1
            d = dh * W + dw
            tap = x2 if d == 0 else pltpu.roll(x2, shift=(-d) % HW, axis=1)
            ok = None
            if dh == -1:
                ok = col >= W
            elif dh == 1:
                ok = col < (H - 1) * W
            if dw == -1:
                m = wpos >= 1
                ok = m if ok is None else jnp.logical_and(ok, m)
            elif dw == 1:
                m = wpos <= W - 2
                ok = m if ok is None else jnp.logical_and(ok, m)
            if ok is not None:
                tap = jnp.where(ok, tap, 0.0)
            taps.append(tap)
    # (72, 256): each piece is (N*CIN, HW) = (8, 256) -> sublane-aligned concat.
    xcol = jnp.concatenate(taps, axis=0)

    # Residual 3x3 conv as one MXU push; rows come out as n*COUT + co (NCHW-flat).
    res = jnp.dot(wbig_ref[...], xcol, preferred_element_type=jnp.float32)   # (16, 256)
    # Shortcut 1x1 conv.
    sc = jnp.dot(wsc_ref[...], x2, preferred_element_type=jnp.float32)       # (16, 256)

    inv_p = 1.0 / float(P)

    def bn(y, gamma, beta):
        # Single-pass batch stats over N*H*W per out-channel (biased variance,
        # BatchNorm2d training semantics).  var = E[y^2] - mean^2 has a minor
        # cancellation risk for large-mean data; negligible at these magnitudes.
        s = jnp.sum(y, axis=1, keepdims=True)              # (N*COUT, 1) lane-reduce
        ss = jnp.sum(y * y, axis=1, keepdims=True)
        s_c = sum(s[n * COUT:(n + 1) * COUT] for n in range(N))     # (COUT, 1)
        ss_c = sum(ss[n * COUT:(n + 1) * COUT] for n in range(N))
        mean = s_c * inv_p
        var = ss_c * inv_p - mean * mean
        scale = gamma * jax.lax.rsqrt(var + EPS)           # fold gamma/beta into
        shift = beta - mean * scale                        # a single FMA below
        scale_nb = jnp.concatenate([scale] * N, axis=0)    # (N*COUT, 1)
        shift_nb = jnp.concatenate([shift] * N, axis=0)
        return y * scale_nb + shift_nb

    res_n = bn(res, g1_ref[...], b1_ref[...])
    sc_n = bn(sc, g2_ref[...], b2_ref[...])
    out_ref[...] = jnp.maximum(res_n + sc_n, 0.0)          # fused add + ReLU, unmasked stores


def pack_params(w_res, w_sc):
    """One-time weight fold (do at init, not per forward call).

    w_res : (COUT, CIN, KH, KW)  PyTorch Conv2d weight of the residual branch
    w_sc  : (COUT, CIN)          PyTorch 1x1 Conv2d weight of the shortcut (squeezed)
    Returns batch-block-diagonal matmul operands so the kernel's single
    (N*COUT, KH*KW*N*CIN) @ (KH*KW*N*CIN, H*W) dot yields NCHW-flat output directly.
    """
    eye_n = jnp.eye(N, dtype=w_res.dtype)
    w_taps = jnp.transpose(w_res, (2, 3, 0, 1)).reshape(KH * KW, COUT, CIN)
    w_big = jnp.concatenate([jnp.kron(eye_n, w_taps[t]) for t in range(KH * KW)], axis=1)
    w_sc_bd = jnp.kron(eye_n, w_sc)
    return w_big, w_sc_bd                                  # (16, 72), (16, 8)


def resconv2d(x_nchw, w_big, w_sc_bd, g1, b1, g2, b2):
    """x_nchw: (N, CIN, H, W) f32 -> (N, COUT, H, W) f32.
    The reshapes here are contiguous (free); no transpose/pad XLA ops around the kernel."""
    x2 = x_nchw.reshape(N * CIN, HW)
    out = pl.pallas_call(
        resconv_kernel,
        out_shape=jax.ShapeDtypeStruct((N * COUT, HW), jnp.float32),
        in_specs=[pl.BlockSpec(memory_space=pltpu.MemorySpace.VMEM)] * 7,
        out_specs=pl.BlockSpec(memory_space=pltpu.MemorySpace.VMEM),
        # Single invocation (no grid): per-grid-step overhead would dominate at this
        # size.  If N/H/W are scaled up, add a "parallel" row-block grid (v7x 2nd TC).
    )(x2, w_big, w_sc_bd, g1, b1, g2, b2)
    return out.reshape(N, COUT, H, W)


def reference(x, w_res, w_sc, g1, b1, g2, b2):
    """Straightforward JAX reference (independent method: explicit pad + einsum)."""
    hp = jax.lax.Precision.HIGHEST
    xp = jnp.pad(x, ((0, 0), (0, 0), (1, 1), (1, 1)))
    res = jnp.zeros((N, COUT, H, W), jnp.float32)
    for kh in range(KH):
        for kw in range(KW):
            res = res + jnp.einsum('oc,nchw->nohw', w_res[:, :, kh, kw],
                                   xp[:, :, kh:kh + H, kw:kw + W], precision=hp)
    sc = jnp.einsum('oc,nchw->nohw', w_sc, x, precision=hp)

    def bn(y, g, b):
        mean = jnp.mean(y, axis=(0, 2, 3), keepdims=True)
        var = jnp.mean(jnp.square(y - mean), axis=(0, 2, 3), keepdims=True)
        return ((y - mean) * jax.lax.rsqrt(var + EPS) * g.reshape(1, COUT, 1, 1)
                + b.reshape(1, COUT, 1, 1))

    return jnp.maximum(bn(res, g1, b1) + bn(sc, g2, b2), 0.0)


if __name__ == "__main__":
    key = jax.random.PRNGKey(0)
    kx, kw1, kw2 = jax.random.split(key, 3)

    # Deterministic parameter init (kaiming-like scaling; no checkpoint loading).
    fan_res = CIN * KH * KW
    w_res = jax.random.normal(kw1, (COUT, CIN, KH, KW), jnp.float32) * (2.0 / fan_res) ** 0.5
    w_sc = jax.random.normal(kw2, (COUT, CIN), jnp.float32) * (2.0 / CIN) ** 0.5

    # BN affine params (norm_affine=True): gamma=1, beta=0 for each branch.
    g1 = jnp.ones((COUT, 1), jnp.float32)
    b1 = jnp.zeros((COUT, 1), jnp.float32)
    g2 = jnp.ones((COUT, 1), jnp.float32)
    b2 = jnp.zeros((COUT, 1), jnp.float32)

    x = jax.random.normal(kx, (N, CIN, H, W), jnp.float32)   # PyTorch NCHW input

    w_big, w_sc_bd = pack_params(w_res, w_sc)                 # one-time fold

    out = jax.jit(resconv2d)(x, w_big, w_sc_bd, g1, b1, g2, b2)
    jax.block_until_ready(out)
    assert out.shape == (N, COUT, H, W)

    # Correctness check against a plain-JAX reference (loose tol: catches structural
    # errors; numeric noise from MXU precision / one-pass variance is far smaller).
    ref = reference(x, w_res, w_sc, g1, b1, g2, b2)
    err = float(jnp.max(jnp.abs(out - ref)))
    assert err < 5e-2, f"max abs err {err}"

    print("KERNEL_OK")
</pallas_src>

<mosaic_0001>
module attributes {stable_mosaic.version = 11 : i64} {
  func.func @resconv_kernel(%arg0: memref<8x256xf32, #tpu.memory_space<vmem>>, %arg1: memref<16x72xf32, #tpu.memory_space<vmem>>, %arg2: memref<16x8xf32, #tpu.memory_space<vmem>>, %arg3: memref<8x1xf32, #tpu.memory_space<vmem>>, %arg4: memref<8x1xf32, #tpu.memory_space<vmem>>, %arg5: memref<8x1xf32, #tpu.memory_space<vmem>>, %arg6: memref<8x1xf32, #tpu.memory_space<vmem>>, %arg7: memref<16x256xf32, #tpu.memory_space<vmem>>) attributes {dimension_semantics = [], scalar_prefetch = 0 : i64, scratch_operands = 0 : i64, tpu.core_type = #tpu.core_type<tc>} {
    %c0 = arith.constant 0 : index
    %c0_0 = arith.constant 0 : index
    %0 = vector.load %arg0[%c0, %c0_0] : memref<8x256xf32, #tpu.memory_space<vmem>>, vector<8x256xf32>
    %1 = tpu.iota {dimensions = array<i32: 1>} : vector<1x256xi32>
    %c15_i32 = arith.constant 15 : i32
    %2 = vector.broadcast %c15_i32 : i32 to vector<1x256xi32>
    %3 = arith.andi %1, %2 : vector<1x256xi32>
    %c17_i32 = arith.constant 17 : i32
    %4 = tpu.dynamic_rotate %0 by %c17_i32 dim 1 : vector<8x256xf32>, i32 -> vector<8x256xf32>
    %c16_i32 = arith.constant 16 : i32
    %5 = vector.broadcast %c16_i32 : i32 to vector<1x256xi32>
    %6 = arith.cmpi sge, %1, %5 : vector<1x256xi32>
    %c1_i32 = arith.constant 1 : i32
    %7 = vector.broadcast %c1_i32 : i32 to vector<1x256xi32>
    %8 = arith.cmpi sge, %3, %7 : vector<1x256xi32>
    %9 = arith.andi %6, %8 : vector<1x256xi1>
    %cst = arith.constant 0.000000e+00 : f32
    %10 = vector.shape_cast %9 : vector<1x256xi1> to vector<1x256xi1>
    %11 = vector.broadcast %10 : vector<1x256xi1> to vector<8x256xi1>
    %12 = vector.broadcast %cst : f32 to vector<8x256xf32>
    %13 = arith.select %11, %4, %12 : vector<8x256xi1>, vector<8x256xf32>
    %c16_i32_1 = arith.constant 16 : i32
    %14 = tpu.dynamic_rotate %0 by %c16_i32_1 dim 1 : vector<8x256xf32>, i32 -> vector<8x256xf32>
    %c16_i32_2 = arith.constant 16 : i32
    %15 = vector.broadcast %c16_i32_2 : i32 to vector<1x256xi32>
    %16 = arith.cmpi sge, %1, %15 : vector<1x256xi32>
    %cst_3 = arith.constant 0.000000e+00 : f32
    %17 = vector.shape_cast %16 : vector<1x256xi1> to vector<1x256xi1>
    %18 = vector.broadcast %17 : vector<1x256xi1> to vector<8x256xi1>
    %19 = vector.broadcast %cst_3 : f32 to vector<8x256xf32>
    %20 = arith.select %18, %14, %19 : vector<8x256xi1>, vector<8x256xf32>
    %c15_i32_4 = arith.constant 15 : i32
    %21 = tpu.dynamic_rotate %0 by %c15_i32_4 dim 1 : vector<8x256xf32>, i32 -> vector<8x256xf32>
    %c16_i32_5 = arith.constant 16 : i32
    %22 = vector.broadcast %c16_i32_5 : i32 to vector<1x256xi32>
    %23 = arith.cmpi sge, %1, %22 : vector<1x256xi32>
    %c14_i32 = arith.constant 14 : i32
    %24 = vector.broadcast %c14_i32 : i32 to vector<1x256xi32>
    %25 = arith.cmpi sle, %3, %24 : vector<1x256xi32>
    %26 = arith.andi %23, %25 : vector<1x256xi1>
    %cst_6 = arith.constant 0.000000e+00 : f32
    %27 = vector.shape_cast %26 : vector<1x256xi1> to vector<1x256xi1>
    %28 = vector.broadcast %27 : vector<1x256xi1> to vector<8x256xi1>
    %29 = vector.broadcast %cst_6 : f32 to vector<8x256xf32>
    %30 = arith.select %28, %21, %29 : vector<8x256xi1>, vector<8x256xf32>
    %c1_i32_7 = arith.constant 1 : i32
    %31 = tpu.dynamic_rotate %0 by %c1_i32_7 dim 1 : vector<8x256xf32>, i32 -> vector<8x256xf32>
    %c1_i32_8 = arith.constant 1 : i32
    %32 = vector.broadcast %c1_i32_8 : i32 to vector<1x256xi32>
    %33 = arith.cmpi sge, %3, %32 : vector<1x256xi32>
    %cst_9 = arith.constant 0.000000e+00 : f32
    %34 = vector.shape_cast %33 : vector<1x256xi1> to vector<1x256xi1>
    %35 = vector.broadcast %34 : vector<1x256xi1> to vector<8x256xi1>
    %36 = vector.broadcast %cst_9 : f32 to vector<8x256xf32>
    %37 = arith.select %35, %31, %36 : vector<8x256xi1>, vector<8x256xf32>
    %c255_i32 = arith.constant 255 : i32
    %38 = tpu.dynamic_rotate %0 by %c255_i32 dim 1 : vector<8x256xf32>, i32 -> vector<8x256xf32>
    %c14_i32_10 = arith.constant 14 : i32
    %39 = vector.broadcast %c14_i32_10 : i32 to vector<1x256xi32>
    %40 = arith.cmpi sle, %3, %39 : vector<1x256xi32>
    %cst_11 = arith.constant 0.000000e+00 : f32
    %41 = vector.shape_cast %40 : vector<1x256xi1> to vector<1x256xi1>
    %42 = vector.broadcast %41 : vector<1x256xi1> to vector<8x256xi1>
    %43 = vector.broadcast %cst_11 : f32 to vector<8x256xf32>
    %44 = arith.select %42, %38, %43 : vector<8x256xi1>, vector<8x256xf32>
    %c241_i32 = arith.constant 241 : i32
    %45 = tpu.dynamic_rotate %0 by %c241_i32 dim 1 : vector<8x256xf32>, i32 -> vector<8x256xf32>
    %c240_i32 = arith.constant 240 : i32
    %46 = vector.broadcast %c240_i32 : i32 to vector<1x256xi32>
    %47 = arith.cmpi slt, %1, %46 : vector<1x256xi32>
    %c1_i32_12 = arith.constant 1 : i32
    %48 = vector.broadcast %c1_i32_12 : i32 to vector<1x256xi32>
    %49 = arith.cmpi sge, %3, %48 : vector<1x256xi32>
    %50 = arith.andi %47, %49 : vector<1x256xi1>
    %cst_13 = arith.constant 0.000000e+00 : f32
    %51 = vector.shape_cast %50 : vector<1x256xi1> to vector<1x256xi1>
    %52 = vector.broadcast %51 : vector<1x256xi1> to vector<8x256xi1>
    %53 = vector.broadcast %cst_13 : f32 to vector<8x256xf32>
    %54 = arith.select %52, %45, %53 : vector<8x256xi1>, vector<8x256xf32>
    %c240_i32_14 = arith.constant 240 : i32
    %55 = tpu.dynamic_rotate %0 by %c240_i32_14 dim 1 : vector<8x256xf32>, i32 -> vector<8x256xf32>
    %c240_i32_15 = arith.constant 240 : i32
    %56 = vector.broadcast %c240_i32_15 : i32 to vector<1x256xi32>
    %57 = arith.cmpi slt, %1, %56 : vector<1x256xi32>
    %cst_16 = arith.constant 0.000000e+00 : f32
    %58 = vector.shape_cast %57 : vector<1x256xi1> to vector<1x256xi1>
    %59 = vector.broadcast %58 : vector<1x256xi1> to vector<8x256xi1>
    %60 = vector.broadcast %cst_16 : f32 to vector<8x256xf32>
    %61 = arith.select %59, %55, %60 : vector<8x256xi1>, vector<8x256xf32>
    %c239_i32 = arith.constant 239 : i32
    %62 = tpu.dynamic_rotate %0 by %c239_i32 dim 1 : vector<8x256xf32>, i32 -> vector<8x256xf32>
    %c240_i32_17 = arith.constant 240 : i32
    %63 = vector.broadcast %c240_i32_17 : i32 to vector<1x256xi32>
    %64 = arith.cmpi slt, %1, %63 : vector<1x256xi32>
    %c14_i32_18 = arith.constant 14 : i32
    %65 = vector.broadcast %c14_i32_18 : i32 to vector<1x256xi32>
    %66 = arith.cmpi sle, %3, %65 : vector<1x256xi32>
    %67 = arith.andi %64, %66 : vector<1x256xi1>
    %cst_19 = arith.constant 0.000000e+00 : f32
    %68 = vector.shape_cast %67 : vector<1x256xi1> to vector<1x256xi1>
    %69 = vector.broadcast %68 : vector<1x256xi1> to vector<8x256xi1>
    %70 = vector.broadcast %cst_19 : f32 to vector<8x256xf32>
    %71 = arith.select %69, %62, %70 : vector<8x256xi1>, vector<8x256xf32>
    %72 = tpu.concatenate %13, %20, %30, %37, %0, %44, %54, %61, %71 in 0 : vector<8x256xf32>, vector<8x256xf32>, vector<8x256xf32>, vector<8x256xf32>, vector<8x256xf32>, vector<8x256xf32>, vector<8x256xf32>, vector<8x256xf32>, vector<8x256xf32> -> vector<72x256xf32>
    %c0_20 = arith.constant 0 : index
    %c0_21 = arith.constant 0 : index
    %73 = vector.load %arg1[%c0_20, %c0_21] : memref<16x72xf32, #tpu.memory_space<vmem>>, vector<16x72xf32>
    %cst_22 = arith.constant dense<0.000000e+00> : vector<16x256xf32>
    %74 = tpu.matmul %73, %72, %cst_22 {dimension_numbers = #tpu.dot_dimension_numbers<[1], [0], [0], [1], [0, 0, 1, 1], [], []>} : vector<16x72xf32>, vector<72x256xf32>, vector<16x256xf32> -> vector<16x256xf32>
    %c0_23 = arith.constant 0 : index
    %c0_24 = arith.constant 0 : index
    %75 = vector.load %arg2[%c0_23, %c0_24] : memref<16x8xf32, #tpu.memory_space<vmem>>, vector<16x8xf32>
    %cst_25 = arith.constant dense<0.000000e+00> : vector<16x256xf32>
    %76 = tpu.matmul %75, %0, %cst_25 {dimension_numbers = #tpu.dot_dimension_numbers<[1], [0], [0], [1], [0, 0, 1, 1], [], []>} : vector<16x8xf32>, vector<8x256xf32>, vector<16x256xf32> -> vector<16x256xf32>
    %c0_26 = arith.constant 0 : index
    %c0_27 = arith.constant 0 : index
    %77 = vector.load %arg3[%c0_26, %c0_27] : memref<8x1xf32, #tpu.memory_space<vmem>>, vector<8x1xf32>
    %c0_28 = arith.constant 0 : index
    %c0_29 = arith.constant 0 : index
    %78 = vector.load %arg4[%c0_28, %c0_29] : memref<8x1xf32, #tpu.memory_space<vmem>>, vector<8x1xf32>
    %cst_30 = arith.constant dense<0.000000e+00> : vector<16xf32>
    %79 = vector.multi_reduction <add>, %74, %cst_30 [1] : vector<16x256xf32> to vector<16xf32>
    %80 = vector.shape_cast %79 : vector<16xf32> to vector<16x1xf32>
    %81 = arith.mulf %74, %74 : vector<16x256xf32>
    %cst_31 = arith.constant dense<0.000000e+00> : vector<16xf32>
    %82 = vector.multi_reduction <add>, %81, %cst_31 [1] : vector<16x256xf32> to vector<16xf32>
    %83 = vector.shape_cast %82 : vector<16xf32> to vector<16x1xf32>
    %84 = vector.extract_strided_slice %80 {offsets = [0, 0], sizes = [8, 1], strides = [1, 1]} : vector<16x1xf32> to vector<8x1xf32>
    %cst_32 = arith.constant 0.000000e+00 : f32
    %85 = vector.broadcast %cst_32 : f32 to vector<8x1xf32>
    %86 = arith.addf %85, %84 : vector<8x1xf32>
    %87 = vector.extract_strided_slice %80 {offsets = [8, 0], sizes = [8, 1], strides = [1, 1]} : vector<16x1xf32> to vector<8x1xf32>
    %88 = arith.addf %86, %87 : vector<8x1xf32>
    %89 = vector.extract_strided_slice %83 {offsets = [0, 0], sizes = [8, 1], strides = [1, 1]} : vector<16x1xf32> to vector<8x1xf32>
    %cst_33 = arith.constant 0.000000e+00 : f32
    %90 = vector.broadcast %cst_33 : f32 to vector<8x1xf32>
    %91 = arith.addf %90, %89 : vector<8x1xf32>
    %92 = vector.extract_strided_slice %83 {offsets = [8, 0], sizes = [8, 1], strides = [1, 1]} : vector<16x1xf32> to vector<8x1xf32>
    %93 = arith.addf %91, %92 : vector<8x1xf32>
    %cst_34 = arith.constant 0.001953125 : f32
    %94 = vector.broadcast %cst_34 : f32 to vector<8x1xf32>
    %95 = arith.mulf %88, %94 : vector<8x1xf32>
    %cst_35 = arith.constant 0.001953125 : f32
    %96 = vector.broadcast %cst_35 : f32 to vector<8x1xf32>
    %97 = arith.mulf %93, %96 : vector<8x1xf32>
    %98 = arith.mulf %95, %95 : vector<8x1xf32>
    %99 = arith.subf %97, %98 : vector<8x1xf32>
    %cst_36 = arith.constant 9.99999974E-6 : f32
    %100 = vector.broadcast %cst_36 : f32 to vector<8x1xf32>
    %101 = arith.addf %99, %100 : vector<8x1xf32>
    %102 = math.rsqrt %101 : vector<8x1xf32>
    %103 = arith.mulf %77, %102 : vector<8x1xf32>
    %104 = arith.mulf %95, %103 : vector<8x1xf32>
    %105 = arith.subf %78, %104 : vector<8x1xf32>
    %106 = tpu.concatenate %103, %103 in 0 : vector<8x1xf32>, vector<8x1xf32> -> vector<16x1xf32>
    %107 = tpu.concatenate %105, %105 in 0 : vector<8x1xf32>, vector<8x1xf32> -> vector<16x1xf32>
    %108 = vector.broadcast %106 : vector<16x1xf32> to vector<16x256xf32>
    %109 = arith.mulf %74, %108 : vector<16x256xf32>
    %110 = vector.broadcast %107 : vector<16x1xf32> to vector<16x256xf32>
    %111 = arith.addf %109, %110 : vector<16x256xf32>
    %c0_37 = arith.constant 0 : index
    %c0_38 = arith.constant 0 : index
    %112 = vector.load %arg5[%c0_37, %c0_38] : memref<8x1xf32, #tpu.memory_space<vmem>>, vector<8x1xf32>
    %c0_39 = arith.constant 0 : index
    %c0_40 = arith.constant 0 : index
    %113 = vector.load %arg6[%c0_39, %c0_40] : memref<8x1xf32, #tpu.memory_space<vmem>>, vector<8x1xf32>
    %cst_41 = arith.constant dense<0.000000e+00> : vector<16xf32>
    %114 = vector.multi_reduction <add>, %76, %cst_41 [1] : vector<16x256xf32> to vector<16xf32>
    %115 = vector.shape_cast %114 : vector<16xf32> to vector<16x1xf32>
    %116 = arith.mulf %76, %76 : vector<16x256xf32>
    %cst_42 = arith.constant dense<0.000000e+00> : vector<16xf32>
    %117 = vector.multi_reduction <add>, %116, %cst_42 [1] : vector<16x256xf32> to vector<16xf32>
    %118 = vector.shape_cast %117 : vector<16xf32> to vector<16x1xf32>
    %119 = vector.extract_strided_slice %115 {offsets = [0, 0], sizes = [8, 1], strides = [1, 1]} : vector<16x1xf32> to vector<8x1xf32>
    %cst_43 = arith.constant 0.000000e+00 : f32
    %120 = vector.broadcast %cst_43 : f32 to vector<8x1xf32>
    %121 = arith.addf %120, %119 : vector<8x1xf32>
    %122 = vector.extract_strided_slice %115 {offsets = [8, 0], sizes = [8, 1], strides = [1, 1]} : vector<16x1xf32> to vector<8x1xf32>
    %123 = arith.addf %121, %122 : vector<8x1xf32>
    %124 = vector.extract_strided_slice %118 {offsets = [0, 0], sizes = [8, 1], strides = [1, 1]} : vector<16x1xf32> to vector<8x1xf32>
    %cst_44 = arith.constant 0.000000e+00 : f32
    %125 = vector.broadcast %cst_44 : f32 to vector<8x1xf32>
    %126 = arith.addf %125, %124 : vector<8x1xf32>
    %127 = vector.extract_strided_slice %118 {offsets = [8, 0], sizes = [8, 1], strides = [1, 1]} : vector<16x1xf32> to vector<8x1xf32>
    %128 = arith.addf %126, %127 : vector<8x1xf32>
    %cst_45 = arith.constant 0.001953125 : f32
    %129 = vector.broadcast %cst_45 : f32 to vector<8x1xf32>
    %130 = arith.mulf %123, %129 : vector<8x1xf32>
    %cst_46 = arith.constant 0.001953125 : f32
    %131 = vector.broadcast %cst_46 : f32 to vector<8x1xf32>
    %132 = arith.mulf %128, %131 : vector<8x1xf32>
    %133 = arith.mulf %130, %130 : vector<8x1xf32>
    %134 = arith.subf %132, %133 : vector<8x1xf32>
    %cst_47 = arith.constant 9.99999974E-6 : f32
    %135 = vector.broadcast %cst_47 : f32 to vector<8x1xf32>
    %136 = arith.addf %134, %135 : vector<8x1xf32>
    %137 = math.rsqrt %136 : vector<8x1xf32>
    %138 = arith.mulf %112, %137 : vector<8x1xf32>
    %139 = arith.mulf %130, %138 : vector<8x1xf32>
    %140 = arith.subf %113, %139 : vector<8x1xf32>
    %141 = tpu.concatenate %138, %138 in 0 : vector<8x1xf32>, vector<8x1xf32> -> vector<16x1xf32>
    %142 = tpu.concatenate %140, %140 in 0 : vector<8x1xf32>, vector<8x1xf32> -> vector<16x1xf32>
    %143 = vector.broadcast %141 : vector<16x1xf32> to vector<16x256xf32>
    %144 = arith.mulf %76, %143 : vector<16x256xf32>
    %145 = vector.broadcast %142 : vector<16x1xf32> to vector<16x256xf32>
    %146 = arith.addf %144, %145 : vector<16x256xf32>
    %147 = arith.addf %111, %146 : vector<16x256xf32>
    %cst_48 = arith.constant 0.000000e+00 : f32
    %148 = vector.broadcast %cst_48 : f32 to vector<16x256xf32>
    %149 = arith.maximumf %147, %148 : vector<16x256xf32>
    %c0_49 = arith.constant 0 : index
    %c0_50 = arith.constant 0 : index
    %150 = vector.load %arg7[%c0_49, %c0_50] : memref<16x256xf32, #tpu.memory_space<vmem>>, vector<16x256xf32>
    tpu.vector_store %arg7[%c0_49, %c0_50], %149 {strides = array<i32>} : memref<16x256xf32, #tpu.memory_space<vmem>>, vector<16x256xf32>,
    return
  }
}

</mosaic_0001>

<bundles_post_ra>
// kernel: resconv2d.1
= control target key start
LH: loop header
LB: loop body
LE: loop exit
PB: predicated region body
PF: predicated region fallthrough
CT: control target
= control target key end

     0   :  { %s533_s28 = smov 15   ;;  %s534_s29 = smov 17   ;;  %vm241_vm0 = vcmask 64512   ;;  %v537_v4 = vmov 0.0   ;;  %v28_v6 = vlaneseq  ;;  %vm542_vm10 = vmmov 1   ;;  %s812_s0 = inlined_call_operand.vmem [shape: f32[8,256], index: 0, kind: input, shape index: {}]   ;;  %s813_s2 = inlined_call_operand.vmem [shape: f32[16,8], index: 2, kind: input, shape index: {}]   ;;  %s814_s1 = inlined_call_operand.vmem [shape: f32[16,72], index: 1, kind: input, shape index: {}]   ;;  %s815_s3 = inlined_call_operand.vmem [shape: f32[8,1], index: 3, kind: input, shape index: {}]   ;;  %s816_s5 = inlined_call_operand.vmem [shape: f32[8,1], index: 5, kind: input, shape index: {}]   ;;  %s817_s4 = inlined_call_operand.vmem [shape: f32[8,1], index: 4, kind: input, shape index: {}]   ;;  %s818_s6 = inlined_call_operand.vmem [shape: f32[8,1], index: 6, kind: input, shape index: {}]   ;;  %s819_s7 = inlined_call_operand.vmem [shape: f32[16,256], index: 7, kind: output, shape index: {}]  }
   0x1   :  { %v587_v0 = vld [vmem:[%s812_s0] sm:$0xff]  ;;  %v592_v1 = vld [vmem:[%s812_s0 + $0x8] sm:$0xff]  ;;  %s535_s9 = smov 1   ;;  %s536_s10 = smov 16   ;;  %312 = vmatprep.mubr.f32.mxu1 %v537_v4  ;;  %226 = vmatprep.mubr.f32.mxu0 %v537_v4 }
   0x2   :  { %v502_v2 = vpack.i.bf16 %v592_v1, %v587_v0  ;;  %248 = vmatprep.subr.mxu1 %v592_v1  ;;  %v239_v3 = vld [vmem:[%s813_s2] sm:$0xff]  ;;  %v240_v5 = vld [vmem:[%s813_s2 + $0x8] sm:$0xff]  ;;  %s538_s12 = smov 127   ;;  %s539_s13 = smov 113   ;;  %v609_v7 = vand.u32 127, %v28_v6 }
   0x3   :  { %249 = vmatpush1.msra.mxu1 %v587_v0  ;;  %s540_s14 = smov 112   ;;  %s541_s15 = smov 111  }
   0x4   :  { %503 = vrot.lane.b32.xlu1 %v502_v2, %s533_s28  ;;  %493 = vrot.lane.b32.xlu0 %v502_v2, %s534_s29  ;;  %v612_v8 = vadd.s32 128, %v609_v7  ;;  %v31_v9 = vand.u32 15, %v609_v7  ;;  %vm40_vm1 = vcmp.ge.s32.totalorder %v609_v7, 16  ;;  %vm69_vm3 = vcmp.lt.s32.totalorder %v609_v7, 15 }
   0x5   :  { %455 = vmatmul.mubr.msk.f32.vlgmr.msra.gmra.mrb[0].mxu1 %vm241_vm0, %v239_v3  ;;  %vm37_vm4 = vcmp.lt.s32.totalorder %v609_v7, 17  ;;  %vm86_vm6 = vcmp.lt.s32.totalorder %v609_v7, 1  ;;  %vm56_vm7 = vcmp.lt.s32.totalorder %v609_v7, 16  ;;  %vm99_vm14 = vcmp.lt.s32.totalorder %v609_v7, 127  ;;  %v154_v3 = vld [vmem:[%s814_s1 + $0x8] sm:$0xff] }
   0x6   :  { %318 = vmatprep.mubr.f32.mxu1 %v537_v4  ;;  %v32_v10 = vand.u32 15, %v612_v8  ;;  %vm617_vm2 = vcmp.ge.s32.totalorder %v31_v9, 1  ;;  %vm652_vm12 = vcmp.le.s32.totalorder %v31_v9, 14 }
   0x7   :  { %vm633_vm8 = vmand %vm40_vm1, %vm617_vm2 }
   0x8   :  { %508 = vrot.lane.b32.xlu1 %v502_v2, %s535_s9  ;;  %498 = vrot.lane.b32.xlu0 %v502_v2, %s536_s10  ;;  %vm623_vm5 = vcmp.ge.s32.totalorder %v32_v10, 1  ;;  %vm637_vm9 = vcmp.le.s32.totalorder %v32_v10, 14  ;;  %vm664_vm13 = vmpackc.low %vm40_vm1, %vm633_vm8 }
   0x9   :  { %456 = vmatmul.mubr.msk.f32.gmra.mrb[2].mxu1 %vm241_vm0, %v240_v5  ;;  %vm648_vm11 = vmpackc.low %vm542_vm10, %vm623_vm5 }
   0xa   :  { %vm464_vm15 = vmpackc.low %vm623_vm5, %vm637_vm9 }
   0xb   :  { %vm677_vm0 = vmand %vm40_vm1, %vm652_vm12  ;;  %vm116_vm1 = vcmp.lt.s32.totalorder %v612_v8, 240 }
   0xc   :  { %513 = vrot.lane.b32.xlu0 %v502_v2, %s538_s12  ;;  %518 = vrot.lane.b32.xlu1 %v502_v2, %s539_s13  ;;  %vm118_vm8 = vmand %vm116_vm1, %vm623_vm5  ;;  %vm142_vm5 = vcmp.lt.s32.totalorder %v609_v7, 111 }
  0x10   :  { %523 = vrot.lane.b32.xlu0 %v502_v2, %s540_s14  ;;  %138 = vrot.lane.b32.xlu1 %v587_v0, %s541_s15  ;;  %v153_v2 = vld [vmem:[%s814_s1] sm:$0xff] }
  0x14   :  { %140 = vrot.lane.b32.xlu0 %v592_v1, %s541_s15 }
  0x76   :  { %v504_v11 = vpop.permute.xlu1 %503  ;;  %v494_v12 = vpop.permute.xlu0 %493 }
  0x77   :  { %v506_v14 = vunpack.i.h.bf16 %v504_v11  ;;  %v505_v15 = vunpack.i.l.bf16 %v504_v11  ;;  %v496_v16 = vunpack.i.h.bf16 %v494_v12  ;;  %v495_v17 = vunpack.i.l.bf16 %v494_v12 }
  0x79   :  { %v70_v27 = vsel %vm69_vm3, %v505_v15, %v506_v14  ;;  %v38_v28 = vsel %vm37_vm4, %v495_v17, %v496_v16  ;;  %v39_v33 = vsel %vm37_vm4, %v496_v16, %v495_v17  ;;  %v71_v45 = vsel %vm69_vm3, %v506_v14, %v505_v15  ;;  %vm467_vm3 = vmpackc.low %vm617_vm2, %vm677_vm0 }
  0x7a   :  { %v509_v19 = vpop.permute.xlu1 %508  ;;  %v499_v20 = vpop.permute.xlu0 %498  ;;  %vm112_vm4 = vcmp.lt.s32.totalorder %v609_v7, 113  ;;  %vm155_vm0 = vcmask 588800  }
  0x7b   :  { %v511_v23 = vunpack.i.h.bf16 %v509_v19  ;;  %v510_v24 = vunpack.i.l.bf16 %v509_v19  ;;  %v501_v25 = vunpack.i.h.bf16 %v499_v20  ;;  %v500_v26 = vunpack.i.l.bf16 %v499_v20 }
  0x7d   :  { %v87_v31 = vsel %vm86_vm6, %v510_v24, %v511_v23  ;;  %v57_v32 = vsel %vm56_vm7, %v500_v26, %v501_v25  ;;  %v58_v34 = vsel %vm56_vm7, %v501_v25, %v500_v26  ;;  %v88_v46 = vsel %vm86_vm6, %v511_v23, %v510_v24  ;;  %vm470_vm7 = vmpackc.low %vm637_vm9, %vm542_vm10 }
  0x7e   :  { %v457_v36 = vpack.c.bf16 %v57_v32, %v38_v28  ;;  %v460_v37 = vpack.c.bf16 %v58_v34, %v39_v33  ;;  %v514_v38 = vpop.permute.xlu0 %513  ;;  %v519_v39 = vpop.permute.xlu1 %518  ;;  %v463_v47 = vpack.c.bf16 %v87_v31, %v70_v27  ;;  %vm129_vm6 = vcmp.lt.s32.totalorder %v609_v7, 112 }
  0x7f   :  { %v516_v40 = vunpack.i.h.bf16 %v514_v38  ;;  %v515_v41 = vunpack.i.l.bf16 %v514_v38  ;;  %v521_v43 = vunpack.i.h.bf16 %v519_v39  ;;  %v520_v44 = vunpack.i.l.bf16 %v519_v39 }
  0x80   :  { %459 = vmatprep.subr.msk.bf16.mxu0 %vm648_vm11, %v457_v36  ;;  %v466_v52 = vpack.c.bf16 %v88_v46, %v71_v45  ;;  %vm473_vm11 = vmpackc.low %vm652_vm12, %vm542_vm10  ;;  %v543_v28 = vmov 0  }
  0x81   :  { %462 = vmatpush1.bf16.msk.msra.mxu0 %vm664_vm13, %v460_v37  ;;  %v101_v48 = vsel %vm99_vm14, %v516_v40, %v515_v41  ;;  %v100_v49 = vsel %vm99_vm14, %v515_v41, %v516_v40  ;;  %v114_v53 = vsel %vm112_vm4, %v521_v43, %v520_v44  ;;  %v113_v58 = vsel %vm112_vm4, %v520_v44, %v521_v43  ;;  %vm476_vm13 = vmpackc.low %vm116_vm1, %vm118_vm8 }
  0x82   :  { %v469_v50 = vpack.c.bf16 %v101_v48, %v592_v1  ;;  %465 = vmatprep.subr.msk.bf16.mxu0 %vm464_vm15, %v463_v47  ;;  %v524_v51 = vpop.permute.xlu0 %523  ;;  %v472_v56 = vpack.c.bf16 %v100_v49, %v587_v0  ;;  %v139_v61 = vpop.permute.xlu1 %138  ;;  %vm479_vm14 = vmpackc.low %vm542_vm10, %vm617_vm2  ;;  %527 = vset.pattern.permute.xlu0 %v543_v28 }
  0x83   :  { %v526_v54 = vunpack.i.h.bf16 %v524_v51  ;;  %v525_v55 = vunpack.i.l.bf16 %v524_v51  ;;  %vm146_vm15 = vmand %vm116_vm1, %vm637_vm9  ;;  %528 = vset.pattern.permute.xlu1 %v543_v28  ;;  %v325_v51 = vld [vmem:[%s815_s3] sm:$0xff] }
  0x85   :  { %468 = vmatpush1.bf16.msk.msra.mxu0 %vm467_vm3, %v466_v52  ;;  %v131_v57 = vsel %vm129_vm6, %v526_v54, %v525_v55  ;;  %v130_v59 = vsel %vm129_vm6, %v525_v55, %v526_v54 }
  0x86   :  { %v475_v60 = vpack.c.bf16 %v131_v57, %v114_v53  ;;  %471 = vmatprep.subr.msk.bf16.mxu0 %vm470_vm7, %v469_v50  ;;  %v141_v62 = vpop.permute.xlu0 %140  ;;  %v478_v63 = vpack.c.bf16 %v130_v59, %v113_v58  ;;  %v374_v53 = vld [vmem:[%s816_s5] sm:$0xff] }
  0x87   :  { %v144_v0 = vsel %vm142_vm5, %v141_v62, %v139_v61  ;;  %v143_v1 = vsel %vm142_vm5, %v139_v61, %v141_v62  ;;  %v326_v58 = vld [vmem:[%s817_s4] sm:$0xff] }
  0x88   :  { %v375_v61 = vld [vmem:[%s818_s6] sm:$0xff] }
  0x89   :  { %474 = vmatpush1.bf16.msk.msra.mxu0 %vm473_vm11, %v472_v56 }
  0x8a   :  { %477 = vmatprep.subr.msk.bf16.mxu0 %vm476_vm13, %v475_v60 }
  0x8d   :  { %480 = vmatpush1.bf16.msk.msra.mxu0 %vm479_vm14, %v478_v63 }
  0x8e   :  { %451 = vmatprep.subr.msk.mxu0 %vm146_vm15, %v144_v0 }
  0x91   :  { %452 = vmatpush1.msk.msra.mxu0 %vm652_vm12, %v143_v1 }
  0x92   :  { %453 = vmatmul.mubr.msk.f32.vlgmr.msra.gmra.mrb[0].mxu0 %vm155_vm0, %v153_v2 }
  0x93   :  { %232 = vmatprep.mubr.f32.mxu0 %v537_v4 }
  0x96   :  { %454 = vmatmul.mubr.msk.f32.gmra.mrb[2].mxu0 %vm155_vm0, %v154_v3 }
  0xd8   :  { %v740_v5 = vpop.f32.mrb[0].mxu1 }
  0xd9   :  { %v742_v6 = vpop.f32.mrb[1].mxu1  ;;  %v382_v8 = vmul.f32 %v740_v5, %v740_v5 }
  0xda   :  { %v376_v7 = vadd.f32 %v742_v6, %v740_v5  ;;  %v383_v9 = vmul.f32 %v742_v6, %v742_v6 }
  0xdc   :  { %v750_v10 = vpop.f32.mrb[2].mxu1  ;;  %377 = vadd.xlane.f32.xlu0 %v376_v7  ;;  %v386_v11 = vadd.f32 %v383_v9, %v382_v8 }
  0xdd   :  { %v752_v4 = vpop.f32.mrb[3].mxu1  ;;  %v384_v14 = vmul.f32 %v750_v10, %v750_v10 }
  0xde   :  { %v385_v12 = vmul.f32 %v752_v4, %v752_v4  ;;  %v379_v13 = vadd.f32 %v752_v4, %v750_v10 }
  0xe0   :  { %380 = vadd.xlane.f32.xlu1 %v379_v13  ;;  %v389_v15 = vadd.f32 %v385_v12, %v384_v14 }
 0x165   :  { %v760_v16 = vpop.f32.mrb[0].mxu0 }
 0x166   :  { %v762_v17 = vpop.f32.mrb[1].mxu0  ;;  %v333_v18 = vmul.f32 %v760_v16, %v760_v16 }
 0x167   :  { %v327_v19 = vadd.f32 %v762_v17, %v760_v16  ;;  %v334_v20 = vmul.f32 %v762_v17, %v762_v17 }
 0x169   :  { %v770_v21 = vpop.f32.mrb[2].mxu0  ;;  %328 = vadd.xlane.f32.xlu1 %v327_v19  ;;  %v337_v22 = vadd.f32 %v334_v20, %v333_v18  ;;  %v378_v29 = vpop.xlane.xlu0 %377 }
 0x16a   :  { %v772_v23 = vpop.f32.mrb[3].mxu0  ;;  %v335_v24 = vmul.f32 %v770_v21, %v770_v21 }
 0x16b   :  { %v336_v25 = vmul.f32 %v772_v23, %v772_v23  ;;  %338 = vadd.xlane.f32.xlu0 %v337_v22  ;;  %v330_v26 = vadd.f32 %v772_v23, %v770_v21 }
 0x16d   :  { %v340_v27 = vadd.f32 %v336_v25, %v335_v24  ;;  %v381_v30 = vpop.xlane.xlu1 %380 }
 0x16e   :  { %v393_v33 = vadd.f32 %v381_v30, %v378_v29 }
 0x16f   :  { %331 = vadd.xlane.f32.xlu0 %v330_v26  ;;  %341 = vadd.xlane.f32.xlu1 %v340_v27 }
 0x170   :  { %v396_v38 = vmul.f32 0.001953125, %v393_v33 }
 0x172   :  { %v398_v45 = vmul.f32 %v396_v38, %v396_v38 }
 0x173   :  { %387 = vadd.xlane.f32.xlu0 %v386_v11  ;;  %390 = vadd.xlane.f32.xlu1 %v389_v15 }
 0x1f6   :  { %v329_v31 = vpop.xlane.xlu1 %328 }
 0x1f8   :  { %v339_v32 = vpop.xlane.xlu0 %338 }
 0x1fc   :  { %v332_v34 = vpop.xlane.xlu0 %331  ;;  %v342_v35 = vpop.xlane.xlu1 %341 }
 0x1fd   :  { %v344_v36 = vadd.f32 %v332_v34, %v329_v31  ;;  %v346_v37 = vadd.f32 %v342_v35, %v339_v32 }
 0x1ff   :  { %v347_v39 = vmul.f32 0.001953125, %v344_v36  ;;  %v348_v43 = vmul.f32 0.001953125, %v346_v37 }
 0x200   :  { %v388_v40 = vpop.xlane.xlu0 %387  ;;  %v391_v41 = vpop.xlane.xlu1 %390 }
 0x201   :  { %v349_v42 = vmul.f32 %v347_v39, %v347_v39  ;;  %v395_v44 = vadd.f32 %v391_v41, %v388_v40 }
 0x203   :  { %v350_v46 = vsub.f32 %v348_v43, %v349_v42  ;;  %v397_v47 = vmul.f32 0.001953125, %v395_v44 }
 0x205   :  { %v351_v48 = vadd.f32 1e-05, %v350_v46  ;;  %v399_v49 = vsub.f32 %v397_v47, %v398_v45 }
 0x207   :  { %529 = vrsqrt.f32 %v351_v48  ;;  %v400_v50 = vadd.f32 1e-05, %v399_v49 }
 0x209   :  { %531 = vrsqrt.f32 %v400_v50 }
 0x211   :  { %v530_v52 = vpop.eup %529 }
 0x212   :  { %v353_v54 = vmul.f32 %v530_v52, %v325_v51 }
 0x213   :  { %v532_v55 = vpop.eup %531 }
 0x214   :  { %358 = vperm.xlu0 %527, %v353_v54   ;;  %v402_v56 = vmul.f32 %v532_v55, %v374_v53  ;;  %v354_v57 = vmul.f32 %v353_v54, %v347_v39 }
 0x216   :  { %407 = vperm.xlu1 %528, %v402_v56   ;;  %v355_v59 = vsub.f32 %v326_v58, %v354_v57  ;;  %v403_v60 = vmul.f32 %v402_v56, %v396_v38 }
 0x218   :  { %v404_v62 = vsub.f32 %v375_v61, %v403_v60 }
 0x21a   :  { %367 = vperm.xlu1 %528, %v355_v59  }
 0x21e   :  { %416 = vperm.xlu1 %528, %v404_v62  }
 0x293   :  { %v359_v0 = vpop.permute.xlu0 %358 }
 0x294   :  { %v361_v2 = vmul.f32 %v359_v0, %v760_v16  ;;  %v362_v3 = vmul.f32 %v359_v0, %v762_v17  ;;  %v363_v7 = vmul.f32 %v359_v0, %v770_v21  ;;  %v364_v8 = vmul.f32 %v359_v0, %v772_v23 }
 0x295   :  { %v408_v63 = vpop.permute.xlu1 %407 }
 0x296   :  { %v410_v9 = vmul.f32 %v408_v63, %v740_v5  ;;  %v411_v11 = vmul.f32 %v408_v63, %v742_v6  ;;  %v412_v12 = vmul.f32 %v408_v63, %v750_v10  ;;  %v413_v13 = vmul.f32 %v408_v63, %v752_v4 }
 0x299   :  { %v368_v1 = vpop.permute.xlu1 %367 }
 0x29a   :  { %v370_v14 = vadd.f32 %v368_v1, %v361_v2  ;;  %v371_v15 = vadd.f32 %v368_v1, %v362_v3  ;;  %v372_v18 = vadd.f32 %v368_v1, %v363_v7  ;;  %v373_v19 = vadd.f32 %v368_v1, %v364_v8 }
 0x29d   :  { %v417_v20 = vpop.permute.xlu1 %416 }
 0x29e   :  { %v419_v16 = vadd.f32 %v417_v20, %v410_v9  ;;  %v420_v22 = vadd.f32 %v417_v20, %v411_v11  ;;  %v421_v17 = vadd.f32 %v417_v20, %v412_v12  ;;  %v422_v24 = vadd.f32 %v417_v20, %v413_v13 }
 0x2a0   :  { %v423_v21 = vadd.f32 %v419_v16, %v370_v14  ;;  %v424_v25 = vadd.f32 %v420_v22, %v371_v15  ;;  %v425_v23 = vadd.f32 %v421_v17, %v372_v18  ;;  %v426_v26 = vadd.f32 %v422_v24, %v373_v19 }
 0x2a2   :  { %v427_v5 = vmax.f32 %v423_v21, 0.0  ;;  %v428_v27 = vmax.f32 %v424_v25, 0.0  ;;  %v429_v6 = vmax.f32 %v425_v23, 0.0  ;;  %v430_v28 = vmax.f32 %v426_v26, 0.0 }
 0x2a4   :  { %431 = vst [vmem:[%s819_s7] sm:$0xff] %v427_v5  ;;  %432 = vst [vmem:[%s819_s7 + $0x8] sm:$0xff] %v428_v27 }
 0x2a5   :  { %433 = vst [vmem:[%s819_s7 + $0x10] sm:$0xff] %v429_v6  ;;  %434 = vst [vmem:[%s819_s7 + $0x18] sm:$0xff] %v430_v28 }

</bundles_post_ra>
